<compile_context>
chip_gen: v7x
topology: tpu7x:2x2x1
jax: 0.10.0
libtpu: 0.0.40
codegen_flags: <defaults>
</compile_context>

<pallas_src>
import jax
import jax.numpy as jnp
from jax.experimental import pallas as pl
from jax.experimental.pallas import tpu as pltpu


def _round_up(x: int, m: int) -> int:
    return ((x + m - 1) // m) * m


def _pad2d(a, rows: int, cols: int):
    pr = rows - a.shape[0]
    pc = cols - a.shape[1]
    if pr == 0 and pc == 0:
        return a
    return jnp.pad(a, ((0, pr), (0, pc)))


def residual_mlp_kernel(x_ref, w1_ref, b1_ref, w2_ref, b2_ref, o_ref):
    # x_ref: (tm, Dp) bf16   w1_ref: (Dp, Hp) bf16   b1_ref: (1, Hp) f32
    # w2_ref: (Hp, Dp) bf16  b2_ref: (1, Dp) f32     o_ref: (tm, Dp) out dtype
    x = x_ref[...]
    # matmul 1 (MXU, f32 accumulate) + bias
    h = jnp.dot(x, w1_ref[...], preferred_element_type=jnp.float32) + b1_ref[...]
    # tanh-approx GELU -> EUP slot
    h = jax.nn.gelu(h, approximate=True)
    # matmul 2 (MXU, bf16 operands, f32 accumulate) + bias
    y = jnp.dot(h.astype(w2_ref.dtype), w2_ref[...],
                preferred_element_type=jnp.float32) + b2_ref[...]
    # residual add in f32: out = func(x) + x
    o_ref[...] = (y + x.astype(jnp.float32)).astype(o_ref.dtype)


def residual_add_mlp(x, w1, b1, w2, b2, *, tm=256,
                     compute_dtype=jnp.bfloat16, out_dtype=None):
    """x: (N, D) token rows. Returns gelu(x@W1+b1)@W2+b2 + x via Pallas."""
    N, D = x.shape
    H = w1.shape[1]
    out_dtype = out_dtype if out_dtype is not None else x.dtype

    # Lane-dense feature dims (multiples of 128); zero padding is exact here.
    Dp = _round_up(D, 128)
    Hp = _round_up(H, 128)

    # Row tile: MXU-aligned (default 256), never larger than the padded row
    # count; multiple of 16 satisfies bf16 sublane packing.
    tm_eff = _round_up(min(tm, _round_up(N, 16)), 16)
    Np = _round_up(N, tm_eff)

    x_c = _pad2d(x.astype(compute_dtype), Np, Dp)
    w1_c = _pad2d(w1.astype(compute_dtype), Dp, Hp)
    w2_c = _pad2d(w2.astype(compute_dtype), Hp, Dp)
    b1_c = _pad2d(b1.reshape(1, H).astype(jnp.float32), 1, Hp)
    b2_c = _pad2d(b2.reshape(1, D).astype(jnp.float32), 1, Dp)

    grid = (Np // tm_eff,)

    flops = 2 * Np * Dp * Hp * 2              # two matmuls
    bytes_accessed = (
        x_c.size * x_c.dtype.itemsize + w1_c.size * w1_c.dtype.itemsize
        + w2_c.size * w2_c.dtype.itemsize + b1_c.size * 4 + b2_c.size * 4
        + Np * Dp * jnp.dtype(out_dtype).itemsize)

    out_p = pl.pallas_call(
        residual_mlp_kernel,
        out_shape=jax.ShapeDtypeStruct((Np, Dp), out_dtype),
        grid_spec=pltpu.PrefetchScalarGridSpec(
            num_scalar_prefetch=0,
            grid=grid,
            in_specs=[
                # x tiles stream over the row axis (default double-buffered).
                pl.BlockSpec((tm_eff, Dp), lambda i: (i, 0)),
                # Weights / biases are grid-invariant -> single-buffered.
                pl.BlockSpec((Dp, Hp), lambda i: (0, 0),
                             pipeline_mode=pl.Buffered(1)),
                pl.BlockSpec((1, Hp), lambda i: (0, 0),
                             pipeline_mode=pl.Buffered(1)),
                pl.BlockSpec((Hp, Dp), lambda i: (0, 0),
                             pipeline_mode=pl.Buffered(1)),
                pl.BlockSpec((1, Dp), lambda i: (0, 0),
                             pipeline_mode=pl.Buffered(1)),
            ],
            out_specs=pl.BlockSpec((tm_eff, Dp), lambda i: (i, 0)),
        ),
        compiler_params=pltpu.CompilerParams(
            # Row axis is embarrassingly parallel -> megacore sharding on v7x.
            dimension_semantics=("parallel",),
            # Above the 16/32 MiB scoped defaults; still within every chip's
            # physical VMEM (64 MiB on v7x, 128 MiB on v5e/v6e).
            vmem_limit_bytes=64 * 1024 * 1024,
        ),
        cost_estimate=pl.CostEstimate(
            flops=flops, transcendentals=Np * Hp,
            bytes_accessed=bytes_accessed),
    )(x_c, w1_c, b1_c, w2_c, b2_c)

    return out_p[:N, :D]


def reference(x, w1, b1, w2, b2, compute_dtype=jnp.bfloat16):
    """Matching-precision JAX reference (same bf16 operand cast, f32 math)."""
    f32 = jnp.float32
    xc = x.astype(compute_dtype).astype(f32)
    w1c = w1.astype(compute_dtype).astype(f32)
    w2c = w2.astype(compute_dtype).astype(f32)
    h = jax.nn.gelu(xc @ w1c + b1.reshape(1, -1).astype(f32), approximate=True)
    y = h.astype(compute_dtype).astype(f32) @ w2c + b2.reshape(1, -1).astype(f32)
    return (y + xc).astype(x.dtype)


if __name__ == "__main__":
    key = jax.random.PRNGKey(0)
    k_x, k_w1, k_b1, k_w2, k_b2 = jax.random.split(key, 5)

    # Small demo shapes (real ViT dims D=768/H=3072 are already lane-dense;
    # do not tune performance from these toy sizes).
    batch, seq, hidden, mlp_hidden = 2, 8, 32, 64

    x_tokens = jax.random.normal(k_x, (batch, seq, hidden), jnp.float32)
    w1 = jax.random.normal(k_w1, (hidden, mlp_hidden), jnp.float32) * 0.02
    b1 = jax.random.normal(k_b1, (1, mlp_hidden), jnp.float32) * 0.02
    w2 = jax.random.normal(k_w2, (mlp_hidden, hidden), jnp.float32) * 0.02
    b2 = jax.random.normal(k_b2, (1, hidden), jnp.float32) * 0.02

    # flatten (B, S, D) -> (B*S, D) token rows for the kernel
    x2d = x_tokens.reshape(batch * seq, hidden)

    out2d = residual_add_mlp(x2d, w1, b1, w2, b2)
    out = out2d.reshape(batch, seq, hidden)
    jax.block_until_ready(out)

    ref = reference(x2d, w1, b1, w2, b2).reshape(batch, seq, hidden)
    assert jnp.allclose(out, ref, atol=1e-2, rtol=1e-2), "mismatch vs reference"

    print("KERNEL_OK")
</pallas_src>

<mosaic_0001>
module attributes {stable_mosaic.version = 11 : i64} {
  func.func @residual_mlp_kernel(%arg0: i32, %arg1: memref<16x128xbf16, #tpu.memory_space<vmem>>, %arg2: memref<128x128xbf16, #tpu.memory_space<vmem>>, %arg3: memref<1x128xf32, #tpu.memory_space<vmem>>, %arg4: memref<128x128xbf16, #tpu.memory_space<vmem>>, %arg5: memref<1x128xf32, #tpu.memory_space<vmem>>, %arg6: memref<16x128xf32, #tpu.memory_space<vmem>>) attributes {dimension_semantics = [#tpu.dimension_semantics<parallel>], iteration_bounds = array<i64: 1>, scalar_prefetch = 0 : i64, scratch_operands = 0 : i64, tpu.core_type = #tpu.core_type<tc>, window_params = [{transform_indices = @transform_0, window_bounds = array<i64: 16, 128>}, {pipeline_mode = #tpu.pipeline_mode<synchronous>, transform_indices = @transform_1, window_bounds = array<i64: 128, 128>}, {pipeline_mode = #tpu.pipeline_mode<synchronous>, transform_indices = @transform_2, window_bounds = array<i64: 1, 128>}, {pipeline_mode = #tpu.pipeline_mode<synchronous>, transform_indices = @transform_3, window_bounds = array<i64: 128, 128>}, {pipeline_mode = #tpu.pipeline_mode<synchronous>, transform_indices = @transform_4, window_bounds = array<i64: 1, 128>}, {transform_indices = @transform_5, window_bounds = array<i64: 16, 128>}]} {
    %c0 = arith.constant 0 : index
    %c0_0 = arith.constant 0 : index
    %0 = vector.load %arg1[%c0, %c0_0] : memref<16x128xbf16, #tpu.memory_space<vmem>>, vector<16x128xbf16>
    %c0_1 = arith.constant 0 : index
    %c0_2 = arith.constant 0 : index
    %1 = vector.load %arg2[%c0_1, %c0_2] : memref<128x128xbf16, #tpu.memory_space<vmem>>, vector<128x128xbf16>
    %cst = arith.constant dense<0.000000e+00> : vector<16x128xf32>
    %2 = tpu.matmul %0, %1, %cst {dimension_numbers = #tpu.dot_dimension_numbers<[1], [0], [0], [1], [0, 0, 1, 1], [], []>} : vector<16x128xbf16>, vector<128x128xbf16>, vector<16x128xf32> -> vector<16x128xf32>
    %c0_3 = arith.constant 0 : index
    %c0_4 = arith.constant 0 : index
    %3 = vector.load %arg3[%c0_3, %c0_4] : memref<1x128xf32, #tpu.memory_space<vmem>>, vector<1x128xf32>
    %4 = vector.broadcast %3 : vector<1x128xf32> to vector<16x128xf32>
    %5 = arith.addf %2, %4 : vector<16x128xf32>
    %6 = arith.mulf %5, %5 : vector<16x128xf32>
    %7 = arith.mulf %5, %6 : vector<16x128xf32>
    %cst_5 = arith.constant 4.471500e-02 : f32
    %8 = vector.broadcast %cst_5 : f32 to vector<16x128xf32>
    %9 = arith.mulf %8, %7 : vector<16x128xf32>
    %10 = arith.addf %5, %9 : vector<16x128xf32>
    %cst_6 = arith.constant 0.797884583 : f32
    %11 = vector.broadcast %cst_6 : f32 to vector<16x128xf32>
    %12 = arith.mulf %11, %10 : vector<16x128xf32>
    %13 = math.tanh %12 : vector<16x128xf32>
    %cst_7 = arith.constant 1.000000e+00 : f32
    %14 = vector.broadcast %cst_7 : f32 to vector<16x128xf32>
    %15 = arith.addf %14, %13 : vector<16x128xf32>
    %cst_8 = arith.constant 5.000000e-01 : f32
    %16 = vector.broadcast %cst_8 : f32 to vector<16x128xf32>
    %17 = arith.mulf %16, %15 : vector<16x128xf32>
    %18 = arith.mulf %5, %17 : vector<16x128xf32>
    %19 = arith.truncf %18 : vector<16x128xf32> to vector<16x128xbf16>
    %c0_9 = arith.constant 0 : index
    %c0_10 = arith.constant 0 : index
    %20 = vector.load %arg4[%c0_9, %c0_10] : memref<128x128xbf16, #tpu.memory_space<vmem>>, vector<128x128xbf16>
    %cst_11 = arith.constant dense<0.000000e+00> : vector<16x128xf32>
    %21 = tpu.matmul %19, %20, %cst_11 {dimension_numbers = #tpu.dot_dimension_numbers<[1], [0], [0], [1], [0, 0, 1, 1], [], []>} : vector<16x128xbf16>, vector<128x128xbf16>, vector<16x128xf32> -> vector<16x128xf32>
    %c0_12 = arith.constant 0 : index
    %c0_13 = arith.constant 0 : index
    %22 = vector.load %arg5[%c0_12, %c0_13] : memref<1x128xf32, #tpu.memory_space<vmem>>, vector<1x128xf32>
    %23 = vector.broadcast %22 : vector<1x128xf32> to vector<16x128xf32>
    %24 = arith.addf %21, %23 : vector<16x128xf32>
    %25 = arith.extf %0 : vector<16x128xbf16> to vector<16x128xf32>
    %26 = arith.addf %24, %25 : vector<16x128xf32>
    %c0_14 = arith.constant 0 : index
    %c0_15 = arith.constant 0 : index
    %27 = vector.load %arg6[%c0_14, %c0_15] : memref<16x128xf32, #tpu.memory_space<vmem>>, vector<16x128xf32>
    tpu.vector_store %arg6[%c0_14, %c0_15], %26 {strides = array<i32>} : memref<16x128xf32, #tpu.memory_space<vmem>>, vector<16x128xf32>,
    return
  }
  func.func @transform_0(%arg0: i32) -> (i32, i32) {
    %c0_i32 = arith.constant 0 : i32
    %c0_i32_0 = arith.constant 0 : i32
    return %arg0, %c0_i32 : i32, i32
  }
  func.func @transform_1(%arg0: i32) -> (i32, i32) {
    %c0_i32 = arith.constant 0 : i32
    %c0_i32_0 = arith.constant 0 : i32
    %c0_i32_1 = arith.constant 0 : i32
    return %c0_i32, %c0_i32_0 : i32, i32
  }
  func.func @transform_2(%arg0: i32) -> (i32, i32) {
    %c0_i32 = arith.constant 0 : i32
    %c0_i32_0 = arith.constant 0 : i32
    %c0_i32_1 = arith.constant 0 : i32
    return %c0_i32, %c0_i32_0 : i32, i32
  }
  func.func @transform_3(%arg0: i32) -> (i32, i32) {
    %c0_i32 = arith.constant 0 : i32
    %c0_i32_0 = arith.constant 0 : i32
    %c0_i32_1 = arith.constant 0 : i32
    return %c0_i32, %c0_i32_0 : i32, i32
  }
  func.func @transform_4(%arg0: i32) -> (i32, i32) {
    %c0_i32 = arith.constant 0 : i32
    %c0_i32_0 = arith.constant 0 : i32
    %c0_i32_1 = arith.constant 0 : i32
    return %c0_i32, %c0_i32_0 : i32, i32
  }
  func.func @transform_5(%arg0: i32) -> (i32, i32) {
    %c0_i32 = arith.constant 0 : i32
    %c0_i32_0 = arith.constant 0 : i32
    return %arg0, %c0_i32 : i32, i32
  }
}

</mosaic_0001>

<bundles_post_ra>
// kernel: tpu_custom_call.1
= control target key start
LH: loop header
LB: loop body
LE: loop exit
PB: predicated region body
PF: predicated region fallthrough
CT: control target
= control target key end

     0   :  { %10 = vsyncpa [#allocation3], 0  ;;  %s748_s0 = inlined_call_operand.hbm [shape: bf16[16,128], index: 0, kind: input, shape index: {}]   ;;  %s749_s1 = inlined_call_operand.hbm [shape: bf16[128,128], index: 1, kind: input, shape index: {}]   ;;  %s750_s2 = inlined_call_operand.hbm [shape: f32[1,128], index: 2, kind: input, shape index: {}]   ;;  %s751_s3 = inlined_call_operand.hbm [shape: bf16[128,128], index: 3, kind: input, shape index: {}]   ;;  %s752_s4 = inlined_call_operand.hbm [shape: f32[1,128], index: 4, kind: input, shape index: {}]   ;;  %s753_s5 = inlined_call_operand.hbm [shape: f32[16,128], index: 5, kind: output, shape index: {}]  }
   0x1   :  { %11 = vsyncpa [#allocation6], 0 }
   0x2   :  { %12 = vsyncpa [#allocation9], 0 }
   0x3   :  { %13 = vsyncpa [#allocation4], 0  ;;  %s613_s18 = smov [#allocation5]   ;;  %s614_s20 = smov [#allocation8]  }
   0x4   :  { %s31_s19 = sshll.u32 %s613_s18, 4  ;;  %s53_s21 = sshll.u32 %s614_s20, 4  ;;  %s32_s19 = int_to_ptr.vmem [resolvable:$true] %s31_s19  ;;  %s655_s21 = int_to_ptr.vmem [resolvable:$true] %s53_s21 }
   0x5   :  { %s473_s24 = scalar_lea.hbm %s749_s1, 1024 }
   0x6   :  { %p474_p0 = scmp.ne.s32.totalorder %s749_s1, %s473_s24  ;;  %p477_p1 = scmp.lt.u32.totalorder %s473_s24, %s749_s1 }
   0x8   :  { %p479_p2 = pnand %p477_p1, %p474_p0 }
   0xa   :  { %482 = shalt.err (!%p479_p2)
}
   0xb   :  { %s483_s29 = scalar_lea.vmem %s32_s19, 1024  ;;  %p488_p4 = scmp.lt.s32.totalorder %s32_s19, %s32_s19 }
   0xc   :  { %p484_p3 = scmp.ne.s32.totalorder %s32_s19, %s483_s29  ;;  %p489_p5 = scmp.lt.s32.totalorder %s483_s29, %s483_s29 }
   0xe   :  { %p490_p6 = por %p489_p5, %p488_p4 }
  0x10   :  { %p491_p7 = pnand %p490_p6, %p484_p3 }
  0x12   :  { %494 = shalt.err (!%p491_p7)
}
  0x13   :  { %s615_s30 = smov 64   ;;  %s616_s6 = smov 4  }
  0x14   :  { %37 = dma.hbm_to_vmem [thread:$0]  %s749_s1, 1024, %s32_s19, [#allocation6], %s615_s30, %s615_s30, %s616_s6  }
  0x15   :  { %s495_s11 = scalar_lea.hbm %s751_s3, 1024 }
  0x16   :  { %p496_p8 = scmp.ne.s32.totalorder %s751_s3, %s495_s11  ;;  %p499_p9 = scmp.lt.u32.totalorder %s495_s11, %s751_s3 }
  0x18   :  { %p501_p10 = pnand %p499_p9, %p496_p8 }
  0x1a   :  { %504 = shalt.err (!%p501_p10)
}
  0x1b   :  { %s505_s16 = scalar_lea.vmem %s655_s21, 1024  ;;  %p510_p12 = scmp.lt.s32.totalorder %s655_s21, %s655_s21 }
  0x1c   :  { %p506_p11 = scmp.ne.s32.totalorder %s655_s21, %s505_s16  ;;  %p511_p13 = scmp.lt.s32.totalorder %s505_s16, %s505_s16 }
  0x1e   :  { %p512_p0 = por %p511_p13, %p510_p12 }
  0x20   :  { %p513_p1 = pnand %p512_p0, %p506_p11 }
  0x22   :  { %516 = shalt.err (!%p513_p1)
}
  0x23   :  { %59 = dma.hbm_to_vmem [thread:$0]  %s751_s3, 1024, %s655_s21, [#allocation9], %s615_s30, %s615_s30, %s616_s6  }
  0x24   :  { %s617_s18 = smov [#allocation2]   ;;  %s618_s20 = smov [#allocation7]  }
  0x25   :  { %s19_s19 = sshll.u32 %s617_s18, 4  ;;  %s44_s22 = sshll.u32 %s618_s20, 4  ;;  %s20_s19 = int_to_ptr.vmem [resolvable:$true] %s19_s19  ;;  %s45_s22 = int_to_ptr.vmem [resolvable:$true] %s44_s22 }
  0x26   :  { %s517_s25 = scalar_lea.hbm %s748_s0, 128 }
  0x27   :  { %p518_p2 = scmp.ne.s32.totalorder %s748_s0, %s517_s25  ;;  %p521_p3 = scmp.lt.u32.totalorder %s517_s25, %s748_s0 }
  0x29   :  { %p523_p4 = pnand %p521_p3, %p518_p2 }
  0x2b   :  { %526 = shalt.err (!%p523_p4)
}
  0x2c   :  { %s527_s3 = scalar_lea.vmem %s20_s19, 128  ;;  %p532_p6 = scmp.lt.s32.totalorder %s20_s19, %s20_s19 }
  0x2d   :  { %p528_p5 = scmp.ne.s32.totalorder %s20_s19, %s527_s3  ;;  %p533_p7 = scmp.lt.s32.totalorder %s527_s3, %s527_s3 }
  0x2f   :  { %p534_p8 = por %p533_p7, %p532_p6 }
  0x31   :  { %p535_p9 = pnand %p534_p8, %p528_p5 }
  0x33   :  { %538 = shalt.err (!%p535_p9)
}
  0x34   :  { %25 = dma.hbm_to_vmem [thread:$0]  %s748_s0, 128, %s20_s19, [#allocation3], %s615_s30, %s615_s30, %s616_s6  }
  0x35   :  { %s539_s10 = scalar_lea.hbm %s750_s2, 16 }
  0x36   :  { %p540_p10 = scmp.ne.s32.totalorder %s750_s2, %s539_s10  ;;  %p543_p11 = scmp.lt.u32.totalorder %s539_s10, %s750_s2 }
  0x38   :  { %p545_p12 = pnand %p543_p11, %p540_p10 }
  0x3a   :  { %548 = shalt.err (!%p545_p12)
}
  0x3b   :  { %s549_s15 = scalar_lea.vmem %s45_s22, 16  ;;  %s553_s16 = scalar_lea.vmem %s45_s22, 32 }
  0x3c   :  { %p550_p13 = scmp.ne.s32.totalorder %s45_s22, %s549_s15  ;;  %p554_p0 = scmp.lt.s32.totalorder %s45_s22, %s45_s22 }
  0x3d   :  { %p555_p1 = scmp.lt.s32.totalorder %s553_s16, %s549_s15 }
  0x3f   :  { %p556_p2 = por %p555_p1, %p554_p0 }
  0x41   :  { %p557_p3 = pnand %p556_p2, %p550_p13 }
  0x43   :  { %560 = shalt.err (!%p557_p3)
}
  0x44   :  { %47 = dma.hbm_to_vmem [thread:$0]  %s750_s2, 16, %s45_s22, [#allocation6]  }
  0x45   :  { %s619_s6 = smov [#allocation10]   ;;  %s561_s19 = scalar_lea.hbm %s752_s4, 16 }
  0x46   :  { %s66_s1 = sshll.u32 %s619_s6, 4  ;;  %p562_p4 = scmp.ne.s32.totalorder %s752_s4, %s561_s19  ;;  %s67_s1 = int_to_ptr.vmem [resolvable:$true] %s66_s1 }
  0x47   :  { %p565_p5 = scmp.lt.u32.totalorder %s561_s19, %s752_s4 }
  0x49   :  { %p567_p6 = pnand %p565_p5, %p562_p4 }
  0x4b   :  { %570 = shalt.err (!%p567_p6)
}
  0x4c   :  { %s571_s26 = scalar_lea.vmem %s67_s1, 16  ;;  %s575_s2 = scalar_lea.vmem %s67_s1, 32 }
  0x4d   :  { %p572_p7 = scmp.ne.s32.totalorder %s67_s1, %s571_s26  ;;  %p576_p8 = scmp.lt.s32.totalorder %s67_s1, %s67_s1 }
  0x4e   :  { %p577_p9 = scmp.lt.s32.totalorder %s575_s2, %s571_s26 }
  0x50   :  { %p578_p10 = por %p577_p9, %p576_p8 }
  0x52   :  { %p579_p11 = pnand %p578_p10, %p572_p7 }
  0x54   :  { %582 = shalt.err (!%p579_p11)
}
  0x55   :  { %69 = dma.hbm_to_vmem [thread:$0]  %s752_s4, 16, %s67_s1, [#allocation9]  }
  0x56   :  { %605 = dma.done.wait [#allocation3], 128  }
  0x57   :  { %606 = vsyncadd [#allocation3], 4294967168 }
  0x58   :  { %607 = dma.done.wait [#allocation6], 1040  }
  0x59   :  { %608 = vsyncadd [#allocation6], 4294966256 }
  0x5a   :  { %609 = dma.done.wait [#allocation9], 1040  }
  0x5b   :  { %610 = vsyncadd [#allocation9], 4294966256  ;;  %v620_v0 = vmov 0.0   ;;  %vm621_vm0 = vmmov 0   ;;  %v451_v1 = vld [vmem:[#allocation5] sm:$0xff]   ;;  %v452_v2 = vld [vmem:[#allocation5 + $0x8] sm:$0xff]  }
  0x5c   :  { %399 = vmatprep.subr.bf16.mxu0 %v620_v0  ;;  %415 = vmatprep.mubr.msk.bf16.mxu0 %vm621_vm0, %v620_v0  ;;  %v453_v3 = vld [vmem:[#allocation5 + $0x10] sm:$0xff]   ;;  %v454_v4 = vld [vmem:[#allocation5 + $0x18] sm:$0xff]   ;;  %v455_v5 = vld [vmem:[#allocation5 + $0x20] sm:$0xff]   ;;  %s622_s4 = smov [#allocation11]  }
  0x5d   :  { %419 = vmatprep.subr.bf16.mxu1 %v620_v0  ;;  %435 = vmatprep.mubr.msk.bf16.mxu1 %vm621_vm0, %v620_v0  ;;  %v456_v6 = vld [vmem:[#allocation5 + $0x28] sm:$0xff]   ;;  %v457_v7 = vld [vmem:[#allocation5 + $0x30] sm:$0xff]   ;;  %v458_v8 = vld [vmem:[#allocation5 + $0x38] sm:$0xff]   ;;  %s348_s28 = sshll.u32 %s622_s4, 4  ;;  %s349_s28 = int_to_ptr.vmem [resolvable:$true] %s348_s28 }
  0x5e   :  { %400 = vmatpush3.bf16.msra.mxu0 %v451_v1  ;;  %v731_v9 = vld [vmem:[#allocation2] sm:$0xff]   ;;  %v460_v10 = vld [vmem:[#allocation8] sm:$0xff]   ;;  %v461_v11 = vld [vmem:[#allocation8 + $0x8] sm:$0xff]   ;;  %s583_s29 = scalar_lea.vmem %s349_s28, 256  ;;  %p588_p13 = scmp.lt.s32.totalorder %s349_s28, %s349_s28 }
  0x5f   :  { %401 = vmatprep.subr.bf16.mxu0 %v620_v0  ;;  %420 = vmatpush3.bf16.msra.mxu1 %v460_v10  ;;  %v462_v12 = vld [vmem:[#allocation8 + $0x10] sm:$0xff]   ;;  %v463_v13 = vld [vmem:[#allocation8 + $0x18] sm:$0xff]   ;;  %v464_v14 = vld [vmem:[#allocation8 + $0x20] sm:$0xff]   ;;  %v337_v45 = vunpack.c.l.bf16 %v731_v9  ;;  %v338_v49 = vunpack.c.h.bf16 %v731_v9  ;;  %p584_p12 = scmp.ne.s32.totalorder %s349_s28, %s583_s29  ;;  %p589_p0 = scmp.lt.s32.totalorder %s583_s29, %s583_s29 }
  0x60   :  { %421 = vmatprep.subr.bf16.mxu1 %v620_v0  ;;  %v465_v15 = vld [vmem:[#allocation8 + $0x28] sm:$0xff]   ;;  %v466_v16 = vld [vmem:[#allocation8 + $0x30] sm:$0xff]   ;;  %v467_v17 = vld [vmem:[#allocation8 + $0x38] sm:$0xff]  }
  0x61   :  { %v362_v18 = vld [vmem:[#allocation7] ss:$0 sm:$0xff]  ;;  %v372_v44 = vld [vmem:[#allocation10] ss:$0 sm:$0xff]  ;;  %p590_p1 = por %p589_p0, %p588_p13 }
  0x62   :  { %402 = vmatpush3.bf16.msra.mxu0 %v452_v2 }
  0x63   :  { %403 = vmatprep.subr.bf16.mxu0 %v620_v0  ;;  %422 = vmatpush3.bf16.msra.mxu1 %v461_v11  ;;  %p591_p2 = pnand %p590_p1, %p584_p12 }
  0x64   :  { %423 = vmatprep.subr.bf16.mxu1 %v620_v0 }
  0x66   :  { %404 = vmatpush3.bf16.msra.mxu0 %v453_v3 }
  0x67   :  { %405 = vmatprep.subr.bf16.mxu0 %v620_v0  ;;  %424 = vmatpush3.bf16.msra.mxu1 %v462_v12 }
  0x68   :  { %425 = vmatprep.subr.bf16.mxu1 %v620_v0 }
  0x6a   :  { %406 = vmatpush3.bf16.msra.mxu0 %v454_v4 }
  0x6b   :  { %407 = vmatprep.subr.bf16.mxu0 %v620_v0  ;;  %426 = vmatpush3.bf16.msra.mxu1 %v463_v13 }
  0x6c   :  { %427 = vmatprep.subr.bf16.mxu1 %v620_v0 }
  0x6e   :  { %408 = vmatpush3.bf16.msra.mxu0 %v455_v5 }
  0x6f   :  { %409 = vmatprep.subr.bf16.mxu0 %v620_v0  ;;  %428 = vmatpush3.bf16.msra.mxu1 %v464_v14 }
  0x70   :  { %429 = vmatprep.subr.bf16.mxu1 %v620_v0 }
  0x72   :  { %410 = vmatpush3.bf16.msra.mxu0 %v456_v6 }
  0x73   :  { %411 = vmatprep.subr.bf16.mxu0 %v620_v0  ;;  %430 = vmatpush3.bf16.msra.mxu1 %v465_v15 }
  0x74   :  { %431 = vmatprep.subr.bf16.mxu1 %v620_v0 }
  0x76   :  { %412 = vmatpush3.bf16.msra.mxu0 %v457_v7 }
  0x77   :  { %413 = vmatprep.subr.bf16.mxu0 %v620_v0  ;;  %432 = vmatpush3.bf16.msra.mxu1 %v466_v16 }
  0x78   :  { %433 = vmatprep.subr.bf16.mxu1 %v620_v0 }
  0x7a   :  { %414 = vmatpush3.bf16.msra.mxu0 %v458_v8 }
  0x7b   :  { %434 = vmatpush3.bf16.msra.mxu1 %v467_v17 }
  0x7d   :  { %416 = vmatmul.mubr.bf16.vlgmr.msra.gmra.mrb[0].mxu0 %v731_v9 }
 0x150   :  { %v199_v19 = vpop.f32.mrb[0].mxu0 }
 0x151   :  { %v200_v20 = vadd.f32 %v362_v18, %v199_v19  ;;  %v417_v21 = vpop.f32.mrb[1].mxu0 }
 0x152   :  { %v202_v22 = vpop.f32.mrb[2].mxu0 }
 0x153   :  { %v206_v23 = vmul.f32 %v200_v20, %v200_v20  ;;  %v203_v24 = vadd.f32 %v362_v18, %v202_v22  ;;  %v418_v25 = vpop.f32.mrb[3].mxu0 }
 0x155   :  { %v208_v26 = vmul.f32 %v206_v23, %v200_v20  ;;  %v207_v27 = vmul.f32 %v203_v24, %v203_v24 }
 0x157   :  { %v210_v28 = vmul.f32 0.044715, %v208_v26  ;;  %v209_v29 = vmul.f32 %v207_v27, %v203_v24 }
 0x159   :  { %v212_v30 = vadd.f32 %v210_v28, %v200_v20  ;;  %v211_v31 = vmul.f32 0.044715, %v209_v29 }
 0x15b   :  { %v214_v32 = vmul.f32 0.7978846, %v212_v30  ;;  %v213_v33 = vadd.f32 %v211_v31, %v203_v24 }
 0x15d   :  { %469 = vtanh.f32 %v214_v32  ;;  %v215_v34 = vmul.f32 0.7978846, %v213_v33 }
 0x15f   :  { %471 = vtanh.f32 %v215_v34 }
 0x167   :  { %v470_v35 = vpop.eup %469 }
 0x168   :  { %v218_v36 = vadd.f32 1.0, %v470_v35 }
 0x169   :  { %v472_v37 = vpop.eup %471 }
 0x16a   :  { %v219_v38 = vadd.f32 1.0, %v472_v37  ;;  %v220_v39 = vmul.f32 0.5, %v218_v36 }
 0x16c   :  { %v221_v40 = vmul.f32 0.5, %v219_v38  ;;  %v222_v41 = vmul.f32 %v220_v39, %v200_v20 }
 0x16e   :  { %v223_v42 = vmul.f32 %v221_v40, %v203_v24 }
 0x170   :  { %v224_v43 = vpack.c.bf16 %v223_v42, %v222_v41 }
 0x172   :  { %436 = vmatmul.mubr.bf16.vlgmr.msra.gmra.mrb[0].mxu1 %v224_v43 }
 0x245   :  { %v330_v46 = vpop.f32.mrb[0].mxu1 }
 0x246   :  { %v331_v47 = vadd.f32 %v372_v44, %v330_v46  ;;  %v437_v48 = vpop.f32.mrb[1].mxu1 }
 0x247   :  { %v333_v50 = vpop.f32.mrb[2].mxu1 }
 0x248   :  { %v339_v51 = vadd.f32 %v337_v45, %v331_v47  ;;  %v334_v52 = vadd.f32 %v372_v44, %v333_v50  ;;  %v438_v53 = vpop.f32.mrb[3].mxu1 }
 0x24a   :  { %341 = vst [vmem:[#allocation11] sm:$0xff] %v339_v51  ;;  %v340_v54 = vadd.f32 %v338_v49, %v334_v52 }
 0x24c   :  { %342 = vst [vmem:[#allocation11 + $0x8] sm:$0xff] %v340_v54 }
 0x24d   :  { %594 = shalt.err (!%p591_p2)
}
 0x24e   :  { %s595_s7 = scalar_lea.hbm %s753_s5, 256 }
 0x24f   :  { %p596_p3 = scmp.ne.s32.totalorder %s753_s5, %s595_s7  ;;  %p599_p4 = scmp.lt.u32.totalorder %s595_s7, %s753_s5 }
 0x251   :  { %p601_p5 = pnand %p599_p4, %p596_p3 }
 0x253   :  { %604 = shalt.err (!%p601_p5)
}
 0x254   :  { %s623_s12 = smov 128   ;;  %s624_s13 = smov 8  }
 0x255   :  { %354 = dma.vmem_to_hbm [thread:$0]  %s349_s28, 256, %s753_s5, [#allocation4], %s623_s12, %s623_s12, %s624_s13  }
 0x256   :  { %611 = dma.done.wait [#allocation4], 256  }
 0x257   :  { %612 = vsyncadd [#allocation4], 4294967040 }
 0x258   :  { %358 = vsyncpa [#allocation3], 1 }
 0x259   :  { %359 = vsyncpa [#allocation6], 1 }
 0x25a   :  { %360 = vsyncpa [#allocation9], 1 }
 0x25b   :  { %361 = vsyncpa [#allocation4], 1 }

</bundles_post_ra>
